<compile_context>
chip_gen: v6e
topology: v6e:2x2x1
jax: 0.10.0
libtpu: 0.0.40
codegen_flags: <defaults>
</compile_context>

<pallas_src>
import jax
import jax.numpy as jnp
from jax.experimental import pallas as pl
from jax.experimental.pallas import tpu as pltpu


def _hourglass_mlp_kernel(x_ref, w1_ref, b1_ref, w2_ref, b2_ref, o_ref):
    # All refs are in the lane-dense ("packed") layout:
    #   x_ref:  (tr, Dp)   tile of packed rows (Dp = D * pack, 128-lane dense)
    #   w1_ref: (Dp, Hp)   block-diagonal first-layer weight (in, out)
    #   b1_ref: (1, Hp)
    #   w2_ref: (Hp, Dp)   block-diagonal second-layer weight (in, out)
    #   b2_ref: (1, Dp)
    #   o_ref:  (tr, Dp)
    x = x_ref[...]
    # Linear 1 (MXU), accumulate in f32
    h = jnp.dot(x, w1_ref[...], preferred_element_type=jnp.float32) + b1_ref[...]
    # SiLU: h * sigmoid(h)  (exp goes to the EUP slot, effectively free here)
    h = h * jax.nn.sigmoid(h)
    # Linear 2 (MXU)
    y = jnp.dot(h.astype(x.dtype), w2_ref[...],
                preferred_element_type=jnp.float32) + b2_ref[...]
    o_ref[...] = y.astype(o_ref.dtype)


def _round_up(a, b):
    return ((a + b - 1) // b) * b


def _block_diag(w, pack):
    """w: (din, dout) -> block-diagonal (pack*din, pack*dout) with w on the diag."""
    if pack == 1:
        return w
    din, dout = w.shape
    eye = jnp.eye(pack, dtype=w.dtype)
    return jnp.einsum("pq,io->piqo", eye, w).reshape(pack * din, pack * dout)


def hourglass_dense_layer(x, w1, b1, w2, b2, *, tile_rows=16384):
    """x: (..., D).  w1: (H, D) PyTorch-style (out, in), b1: (H,),
    w2: (D, H), b2: (D,).  Returns same shape/dtype as x."""
    orig_shape = x.shape
    D = orig_shape[-1]
    H = w1.shape[0]
    dtype = x.dtype
    itemsize = jnp.dtype(dtype).itemsize

    N = 1
    for s in orig_shape[:-1]:
        N *= s
    x2 = x.reshape(N, D)

    # Lane-dense packing: view `pack` consecutive rows as a single 128-wide row.
    # This is a free (bit-identical) reshape of the row-major (N, D) array.
    if D < 128 and 128 % D == 0:
        pack = 128 // D
    else:
        pack = 1
    Dp, Hp = D * pack, H * pack

    # Desired tile height in packed rows (sublane multiple of 8).
    desired_tr = max(8, _round_up(max(1, tile_rows // pack), 8))

    n_packed = -(-N // pack)                      # ceil(N / pack)
    if n_packed <= desired_tr:
        # Single grid step: block covers the whole (8-aligned) extent.
        tr = max(8, _round_up(n_packed, 8))
        n_packed = tr
    else:
        tr = desired_tr                           # partial last block handled by Pallas

    rows_pad = n_packed * pack
    if rows_pad != N:
        # Only pads to a multiple of `pack` (or tile for tiny inputs); for the
        # common case (N % pack == 0, N > one tile) no copy of x is made.
        x2 = jnp.concatenate(
            [x2, jnp.zeros((rows_pad - N, D), dtype=dtype)], axis=0)
    x_packed = x2.reshape(n_packed, Dp)

    # Kernel-friendly (in, out) layouts; replicate into block-diagonal form so
    # the packed matmuls compute `pack` independent rows per packed row.
    # Weights stay tiny here; for realistic widths on v7x (64 MiB VMEM) they
    # should be single-buffered or K-tiled instead of fully resident.
    w1_k = _block_diag(w1.T.astype(dtype), pack)                  # (Dp, Hp)
    w2_k = _block_diag(w2.T.astype(dtype), pack)                  # (Hp, Dp)
    b1_k = jnp.tile(b1.reshape(1, H).astype(dtype), (1, pack))    # (1, Hp)
    b2_k = jnp.tile(b2.reshape(1, D).astype(dtype), (1, pack))    # (1, Dp)

    grid = pl.cdiv(n_packed, tr)

    cost = pl.CostEstimate(
        flops=4 * N * D * H,                    # two matmuls, 2 flops / MAC
        transcendentals=N * H,                  # exp inside sigmoid
        bytes_accessed=2 * N * D * itemsize + (2 * D * H + D + H) * itemsize,
    )

    out_packed = pl.pallas_call(
        _hourglass_mlp_kernel,
        out_shape=jax.ShapeDtypeStruct((n_packed, Dp), dtype),
        grid_spec=pltpu.PrefetchScalarGridSpec(
            num_scalar_prefetch=0,
            grid=(grid,),
            in_specs=[
                pl.BlockSpec((tr, Dp), lambda i: (i, 0)),   # x rows (streamed)
                pl.BlockSpec((Dp, Hp), lambda i: (0, 0)),   # w1 (resident)
                pl.BlockSpec((1, Hp), lambda i: (0, 0)),    # b1 (resident)
                pl.BlockSpec((Hp, Dp), lambda i: (0, 0)),   # w2 (resident)
                pl.BlockSpec((1, Dp), lambda i: (0, 0)),    # b2 (resident)
            ],
            out_specs=pl.BlockSpec((tr, Dp), lambda i: (i, 0)),
        ),
        compiler_params=pltpu.CompilerParams(
            dimension_semantics=("parallel",),      # shards rows across TCs on v7x
            vmem_limit_bytes=32 * 1024 * 1024,
        ),
        cost_estimate=cost,
    )(x_packed, w1_k, b1_k, w2_k, b2_k)

    y = out_packed.reshape(n_packed * pack, D)[:N]
    return y.reshape(orig_shape)


if __name__ == "__main__":
    # Module config: input_dim=32, downscale_ratio=4 -> hidden=8
    input_dim = 32
    downscale_ratio = 4
    hidden = input_dim // downscale_ratio

    batch, seq = 2, 8

    key = jax.random.PRNGKey(0)
    kx, kw1, kb1, kw2, kb2 = jax.random.split(key, 5)

    x = jax.random.normal(kx, (batch, seq, input_dim), dtype=jnp.float32)

    # Deterministic parameter init (PyTorch Linear weight layout: (out, in)).
    bound1 = 1.0 / (input_dim ** 0.5)
    w1 = jax.random.uniform(kw1, (hidden, input_dim), jnp.float32, -bound1, bound1)
    b1 = jax.random.uniform(kb1, (hidden,), jnp.float32, -bound1, bound1)
    bound2 = 1.0 / (hidden ** 0.5)
    w2 = jax.random.uniform(kw2, (input_dim, hidden), jnp.float32, -bound2, bound2)
    b2 = jax.random.uniform(kb2, (input_dim,), jnp.float32, -bound2, bound2)

    y = hourglass_dense_layer(x, w1, b1, w2, b2)
    jax.block_until_ready(y)

    # Pure-JAX reference check
    h_ref = x @ w1.T + b1
    h_ref = h_ref * jax.nn.sigmoid(h_ref)
    y_ref = h_ref @ w2.T + b2
    assert y.shape == x.shape and y.dtype == x.dtype
    assert jnp.allclose(y, y_ref, atol=1e-5, rtol=1e-5)

    print("KERNEL_OK")
</pallas_src>

<mosaic_0001>
module attributes {stable_mosaic.version = 11 : i64} {
  func.func @_hourglass_mlp_kernel(%arg0: i32, %arg1: memref<8x128xf32, #tpu.memory_space<vmem>>, %arg2: memref<128x32xf32, #tpu.memory_space<vmem>>, %arg3: memref<1x32xf32, #tpu.memory_space<vmem>>, %arg4: memref<32x128xf32, #tpu.memory_space<vmem>>, %arg5: memref<1x128xf32, #tpu.memory_space<vmem>>, %arg6: memref<8x128xf32, #tpu.memory_space<vmem>>) attributes {dimension_semantics = [#tpu.dimension_semantics<parallel>], iteration_bounds = array<i64: 1>, scalar_prefetch = 0 : i64, scratch_operands = 0 : i64, tpu.core_type = #tpu.core_type<tc>, window_params = [{transform_indices = @transform_0, window_bounds = array<i64: 8, 128>}, {pipeline_mode = #tpu.pipeline_mode<synchronous>, transform_indices = @transform_1, window_bounds = array<i64: 128, 32>}, {pipeline_mode = #tpu.pipeline_mode<synchronous>, transform_indices = @transform_2, window_bounds = array<i64: 1, 32>}, {pipeline_mode = #tpu.pipeline_mode<synchronous>, transform_indices = @transform_3, window_bounds = array<i64: 32, 128>}, {pipeline_mode = #tpu.pipeline_mode<synchronous>, transform_indices = @transform_4, window_bounds = array<i64: 1, 128>}, {transform_indices = @transform_5, window_bounds = array<i64: 8, 128>}]} {
    %c0 = arith.constant 0 : index
    %c0_0 = arith.constant 0 : index
    %0 = vector.load %arg1[%c0, %c0_0] : memref<8x128xf32, #tpu.memory_space<vmem>>, vector<8x128xf32>
    %c0_1 = arith.constant 0 : index
    %c0_2 = arith.constant 0 : index
    %1 = vector.load %arg2[%c0_1, %c0_2] : memref<128x32xf32, #tpu.memory_space<vmem>>, vector<128x32xf32>
    %cst = arith.constant dense<0.000000e+00> : vector<8x32xf32>
    %2 = tpu.matmul %0, %1, %cst {dimension_numbers = #tpu.dot_dimension_numbers<[1], [0], [0], [1], [0, 0, 1, 1], [], []>} : vector<8x128xf32>, vector<128x32xf32>, vector<8x32xf32> -> vector<8x32xf32>
    %c0_3 = arith.constant 0 : index
    %c0_4 = arith.constant 0 : index
    %3 = vector.load %arg3[%c0_3, %c0_4] : memref<1x32xf32, #tpu.memory_space<vmem>>, vector<1x32xf32>
    %4 = vector.broadcast %3 : vector<1x32xf32> to vector<8x32xf32>
    %5 = arith.addf %2, %4 : vector<8x32xf32>
    %6 = arith.negf %5 : vector<8x32xf32>
    %7 = math.exp %6 : vector<8x32xf32>
    %cst_5 = arith.constant 1.000000e+00 : f32
    %8 = vector.broadcast %cst_5 : f32 to vector<8x32xf32>
    %9 = arith.addf %8, %7 : vector<8x32xf32>
    %10 = arith.divf %8, %9 : vector<8x32xf32>
    %11 = arith.mulf %5, %10 : vector<8x32xf32>
    %c0_6 = arith.constant 0 : index
    %c0_7 = arith.constant 0 : index
    %12 = vector.load %arg4[%c0_6, %c0_7] : memref<32x128xf32, #tpu.memory_space<vmem>>, vector<32x128xf32>
    %cst_8 = arith.constant dense<0.000000e+00> : vector<8x128xf32>
    %13 = tpu.matmul %11, %12, %cst_8 {dimension_numbers = #tpu.dot_dimension_numbers<[1], [0], [0], [1], [0, 0, 1, 1], [], []>} : vector<8x32xf32>, vector<32x128xf32>, vector<8x128xf32> -> vector<8x128xf32>
    %c0_9 = arith.constant 0 : index
    %c0_10 = arith.constant 0 : index
    %14 = vector.load %arg5[%c0_9, %c0_10] : memref<1x128xf32, #tpu.memory_space<vmem>>, vector<1x128xf32>
    %15 = vector.broadcast %14 : vector<1x128xf32> to vector<8x128xf32>
    %16 = arith.addf %13, %15 : vector<8x128xf32>
    %c0_11 = arith.constant 0 : index
    %c0_12 = arith.constant 0 : index
    %17 = vector.load %arg6[%c0_11, %c0_12] : memref<8x128xf32, #tpu.memory_space<vmem>>, vector<8x128xf32>
    tpu.vector_store %arg6[%c0_11, %c0_12], %16 {strides = array<i32>} : memref<8x128xf32, #tpu.memory_space<vmem>>, vector<8x128xf32>,
    return
  }
  func.func @transform_0(%arg0: i32) -> (i32, i32) {
    %c0_i32 = arith.constant 0 : i32
    %c0_i32_0 = arith.constant 0 : i32
    return %arg0, %c0_i32 : i32, i32
  }
  func.func @transform_1(%arg0: i32) -> (i32, i32) {
    %c0_i32 = arith.constant 0 : i32
    %c0_i32_0 = arith.constant 0 : i32
    %c0_i32_1 = arith.constant 0 : i32
    return %c0_i32, %c0_i32_0 : i32, i32
  }
  func.func @transform_2(%arg0: i32) -> (i32, i32) {
    %c0_i32 = arith.constant 0 : i32
    %c0_i32_0 = arith.constant 0 : i32
    %c0_i32_1 = arith.constant 0 : i32
    return %c0_i32, %c0_i32_0 : i32, i32
  }
  func.func @transform_3(%arg0: i32) -> (i32, i32) {
    %c0_i32 = arith.constant 0 : i32
    %c0_i32_0 = arith.constant 0 : i32
    %c0_i32_1 = arith.constant 0 : i32
    return %c0_i32, %c0_i32_0 : i32, i32
  }
  func.func @transform_4(%arg0: i32) -> (i32, i32) {
    %c0_i32 = arith.constant 0 : i32
    %c0_i32_0 = arith.constant 0 : i32
    %c0_i32_1 = arith.constant 0 : i32
    return %c0_i32, %c0_i32_0 : i32, i32
  }
  func.func @transform_5(%arg0: i32) -> (i32, i32) {
    %c0_i32 = arith.constant 0 : i32
    %c0_i32_0 = arith.constant 0 : i32
    return %arg0, %c0_i32 : i32, i32
  }
}

</mosaic_0001>

<bundles_post_ra>
// kernel: tpu_custom_call.1
= control target key start
LH: loop header
LB: loop body
LE: loop exit
PB: predicated region body
PF: predicated region fallthrough
CT: control target
= control target key end

     0   :  { %v323_v1 = vmov 0.0   ;;  %vm324_vm0 = vmmov 0   ;;  %s428_s0 = inlined_call_operand.vmem [shape: f32[8,128], index: 0, kind: input, shape index: {}]   ;;  %s429_s1 = inlined_call_operand.vmem [shape: f32[128,32], index: 1, kind: input, shape index: {}]   ;;  %s430_s2 = inlined_call_operand.vmem [shape: f32[1,32], index: 2, kind: input, shape index: {}]   ;;  %s431_s3 = inlined_call_operand.vmem [shape: f32[32,128], index: 3, kind: input, shape index: {}]   ;;  %s432_s4 = inlined_call_operand.vmem [shape: f32[1,128], index: 4, kind: input, shape index: {}]   ;;  %s433_s5 = inlined_call_operand.hbm [shape: f32[8,128], index: 5, kind: output, shape index: {}]  }
   0x1   :  { %v37_v0 = vld [vmem:[%s429_s1 + $0x78] sm:$0xff]  ;;  %248 = vmatprep.subr.mxu0 %v323_v1  ;;  %v36_v2 = vld [vmem:[%s429_s1 + $0x70] sm:$0xff]  ;;  %280 = vmatprep.mubr.msk.f32.mxu0 %vm324_vm0, %v323_v1  ;;  %v35_v3 = vld [vmem:[%s429_s1 + $0x68] sm:$0xff] }
   0x2   :  { %249 = vmatpush3.msra.mxu0 %v37_v0  ;;  %283 = vmatprep.subr.mxu1 %v323_v1  ;;  %v34_v4 = vld [vmem:[%s429_s1 + $0x60] sm:$0xff] }
   0x3   :  { %250 = vmatprep.subr.mxu0 %v323_v1  ;;  %291 = vmatprep.mubr.msk.f32.mxu1 %vm324_vm0, %v323_v1 }
   0x4   :  { %251 = vmatpush3.msra.mxu0 %v36_v2 }
   0x5   :  { %252 = vmatprep.subr.mxu0 %v323_v1 }
   0x6   :  { %253 = vmatpush3.msra.mxu0 %v35_v3 }
   0x7   :  { %10 = vsyncpa [#allocation3], 0  ;;  %254 = vmatprep.subr.mxu0 %v323_v1  ;;  %v33_v5 = vld [vmem:[%s429_s1 + $0x58] sm:$0xff]  ;;  %v32_v6 = vld [vmem:[%s429_s1 + $0x50] sm:$0xff]  ;;  %vm133_vm1 = vcmask 261120  }
   0x8   :  { %255 = vmatpush3.msra.mxu0 %v34_v4  ;;  %v31_v7 = vld [vmem:[%s429_s1 + $0x48] sm:$0xff]  ;;  %v30_v8 = vld [vmem:[%s429_s1 + $0x40] sm:$0xff]  ;;  %v29_v9 = vld [vmem:[%s429_s1 + $0x38] sm:$0xff] }
   0x9   :  { %256 = vmatprep.subr.mxu0 %v323_v1  ;;  %v28_v10 = vld [vmem:[%s429_s1 + $0x30] sm:$0xff]  ;;  %v27_v11 = vld [vmem:[%s429_s1 + $0x28] sm:$0xff]  ;;  %v26_v12 = vld [vmem:[%s429_s1 + $0x20] sm:$0xff] }
   0xa   :  { %257 = vmatpush3.msra.mxu0 %v33_v5  ;;  %v25_v13 = vld [vmem:[%s429_s1 + $0x18] sm:$0xff]  ;;  %v24_v14 = vld [vmem:[%s429_s1 + $0x10] sm:$0xff]  ;;  %v23_v15 = vld [vmem:[%s429_s1 + $0x8] sm:$0xff] }
   0xb   :  { %258 = vmatprep.subr.mxu0 %v323_v1  ;;  %v22_v16 = vld [vmem:[%s429_s1] sm:$0xff]  ;;  %v125_v18 = vld [vmem:[%s431_s3 + $0x18] sm:$0xff]  ;;  %v124_v19 = vld [vmem:[%s431_s3 + $0x10] sm:$0xff] }
   0xc   :  { %259 = vmatpush3.msra.mxu0 %v32_v6  ;;  %v21_v17 = vld [vmem:[%s428_s0] sm:$0xff]  ;;  %284 = vmatpush3.msra.mxu1 %v125_v18  ;;  %v123_v20 = vld [vmem:[%s431_s3 + $0x8] sm:$0xff] }
   0xd   :  { %260 = vmatprep.subr.mxu0 %v323_v1  ;;  %285 = vmatprep.subr.mxu1 %v323_v1  ;;  %v122_v21 = vld [vmem:[%s431_s3] sm:$0xff]  ;;  %s325_s3 = smov [#allocation2]  }
   0xe   :  { %261 = vmatpush3.msra.mxu0 %v31_v7  ;;  %286 = vmatpush3.msra.mxu1 %v124_v19  ;;  %v222_v22 = vld [vmem:[%s430_s2] ss:$0 sm:$0xff]  ;;  %s214_s12 = sshll.u32 %s325_s3, 4  ;;  %s215_s12 = int_to_ptr.vmem [resolvable:$true] %s214_s12 }
   0xf   :  { %262 = vmatprep.subr.mxu0 %v323_v1  ;;  %287 = vmatprep.subr.mxu1 %v323_v1  ;;  %v224_v31 = vld [vmem:[%s432_s4] ss:$0 sm:$0xff]  ;;  %s301_s2 = scalar_lea.vmem %s215_s12, 128  ;;  %p306_p1 = scmp.lt.s32.totalorder %s215_s12, %s215_s12 }
  0x10   :  { %263 = vmatpush3.msra.mxu0 %v30_v8  ;;  %288 = vmatpush3.msra.mxu1 %v123_v20  ;;  %p302_p0 = scmp.ne.s32.totalorder %s215_s12, %s301_s2  ;;  %p307_p2 = scmp.lt.s32.totalorder %s301_s2, %s301_s2 }
  0x11   :  { %264 = vmatprep.subr.mxu0 %v323_v1  ;;  %289 = vmatprep.subr.mxu1 %v323_v1 }
  0x12   :  { %265 = vmatpush3.msra.mxu0 %v29_v9  ;;  %290 = vmatpush3.msra.mxu1 %v122_v21  ;;  %p308_p3 = por %p307_p2, %p306_p1 }
  0x13   :  { %266 = vmatprep.subr.mxu0 %v323_v1 }
  0x14   :  { %267 = vmatpush3.msra.mxu0 %v28_v10  ;;  %p309_p4 = pnand %p308_p3, %p302_p0 }
  0x15   :  { %268 = vmatprep.subr.mxu0 %v323_v1 }
  0x16   :  { %269 = vmatpush3.msra.mxu0 %v27_v11 }
  0x17   :  { %270 = vmatprep.subr.mxu0 %v323_v1 }
  0x18   :  { %271 = vmatpush3.msra.mxu0 %v26_v12 }
  0x19   :  { %272 = vmatprep.subr.mxu0 %v323_v1 }
  0x1a   :  { %273 = vmatpush3.msra.mxu0 %v25_v13 }
  0x1b   :  { %274 = vmatprep.subr.mxu0 %v323_v1 }
  0x1c   :  { %275 = vmatpush3.msra.mxu0 %v24_v14 }
  0x1d   :  { %276 = vmatprep.subr.mxu0 %v323_v1 }
  0x1e   :  { %277 = vmatpush3.msra.mxu0 %v23_v15 }
  0x1f   :  { %278 = vmatprep.subr.mxu0 %v323_v1 }
  0x20   :  { %279 = vmatpush3.msra.mxu0 %v22_v16 }
  0x21   :  { %281 = vmatmul.mubr.f32.vlgmr.msra.gmra.mxu0 %v21_v17 }
  0xe1   :  { %v111_v23 = vpop.f32.mrf.mxu0 }
  0xe2   :  { %v112_v24 = vadd.f32 %v222_v22, %v111_v23 }
  0xe3   :  { %v282_v25 = vpop.f32.mrf.mxu0 }
  0xe4   :  { %v223_v26 = vmul.f32 -1.442695, %v112_v24 }
  0xe6   :  { %297 = vpow2.f32 %v223_v26 }
  0xf3   :  { %v298_v27 = vpop.eup %297 }
  0xf4   :  { %v118_v28 = vadd.f32 1.0, %v298_v27 }
  0xf6   :  { %299 = vrcp.f32 %v118_v28 }
 0x103   :  { %v300_v29 = vpop.eup %299 }
 0x104   :  { %v121_v30 = vmul.f32 %v300_v29, %v112_v24 }
 0x106   :  { %292 = vmatmul.mubr.msk.f32.vlgmr.msra.gmra.mxu1 %vm133_vm1, %v121_v30 }
 0x1c6   :  { %v203_v32 = vpop.f32.mrf.mxu1 }
 0x1c7   :  { %v204_v33 = vadd.f32 %v224_v31, %v203_v32 }
 0x1c8   :  { %v293_v34 = vpop.f32.mrf.mxu1 }
 0x1c9   :  { %207 = vst [vmem:[#allocation2] sm:$0xff] %v204_v33 }
 0x1ca   :  { %312 = shalt.err (!%p309_p4)
}
 0x1cb   :  { %217 = dma.vmem_to_hbm [thread:$0]  %s215_s12, 128, %s433_s5, [#allocation3]  }
 0x1cc   :  { %321 = dma.done.wait [#allocation3], 128  }
 0x1cd   :  { %322 = vsyncadd [#allocation3], 4294967168 }
 0x1ce   :  { %221 = vsyncpa [#allocation3], 1 }

</bundles_post_ra>
